<compile_context>
chip_gen: v6e
topology: v6e:2x2x1
jax: 0.10.0
libtpu: 0.0.40
codegen_flags: <defaults>
</compile_context>

<pallas_src>
import functools
import types

import jax
import jax.numpy as jnp
from jax.experimental import pallas as pl
from jax.experimental.pallas import tpu as pltpu

IGNORE_INDEX = 255


# ----------------------------- hardware heuristics -----------------------------
def _device_kind():
    try:
        return jax.devices()[0].device_kind.lower()
    except Exception:
        return ""


_VMEM_CAP = [None]


def _vmem_capacity_bytes():
    if _VMEM_CAP[0] is None:
        cap = None
        try:
            info = pltpu.get_tpu_info()
            cap = int(getattr(info, "vmem_capacity_bytes", 0)) or None
        except Exception:
            cap = None
        if cap is None:
            kind = _device_kind()
            if "v7" in kind:
                cap = 64 * 1024 * 1024
            elif "v5" in kind or "v6" in kind:
                cap = 128 * 1024 * 1024
            else:
                cap = 64 * 1024 * 1024  # conservative default
        _VMEM_CAP[0] = cap
    return _VMEM_CAP[0]


_BF16_EUP = [None]


def _has_bf16_eup():
    # v6e/v7x EUP runs bf16 transcendentals ~2x faster; v5e has no bf16 EUP.
    if _BF16_EUP[0] is None:
        kind = _device_kind()
        _BF16_EUP[0] = ("v6" in kind) or ("v7" in kind)
    return _BF16_EUP[0]


# --------------------------------- kernel math ----------------------------------
def _flat_pixel_index(shape):
    """Flattened in-block pixel index over the trailing (pixel) dims of `shape`."""
    idx = None
    stride = 1
    for ax in range(len(shape) - 1, 0, -1):
        term = jax.lax.broadcasted_iota(jnp.int32, shape, ax) * stride
        idx = term if idx is None else idx + term
        stride *= shape[ax]
    return idx


def _ce_block(logits, tgt, pix_start, total_p, use_bf16_exp):
    """Per-pixel CE with ignore_index + out-of-bounds masking.

    logits: (C, *pix) in native dtype; tgt: (1, *pix) any integer dtype.
    Returns (loss, valid) both float32 of shape (1, *pix).
    """
    tgt = tgt.astype(jnp.int32)

    # numerically stable logsumexp over the class axis (axis 0)
    m = jnp.max(logits, axis=0, keepdims=True)
    z = logits - m
    if use_bf16_exp:
        # values are in (0, 1] after the max subtraction; accumulate the sum in f32
        e = jnp.exp(z.astype(jnp.bfloat16)).astype(jnp.float32)
    else:
        e = jnp.exp(z.astype(jnp.float32))
    lse = m.astype(jnp.float32) + jnp.log(jnp.sum(e, axis=0, keepdims=True))

    # gather the target logit via a one-hot compare against a class iota
    cls = jax.lax.broadcasted_iota(jnp.int32, logits.shape, 0)
    tgt_logit = jnp.sum(
        jnp.where(cls == tgt, logits, 0).astype(jnp.float32), axis=0, keepdims=True)

    # mask: ignore_index pixels and pixels past the real pixel count (this also
    # suppresses any inf/NaN produced on Pallas-padded ragged-tile lanes)
    in_bounds = (pix_start + _flat_pixel_index(tgt.shape)) < total_p
    valid = jnp.logical_and(tgt != IGNORE_INDEX, in_bounds)
    loss = jnp.where(valid, lse - tgt_logit, 0.0)
    return loss, valid.astype(jnp.float32)


def _ce_sum_kernel(logits_ref, tgt_ref, sum_loss_ref, sum_valid_ref, *,
                   pix_per_block, total_p, n_inner, use_bf16_exp):
    """Fused reduction: per-(batch, chunk) lane-wise partial sums of loss/#valid."""
    c = pl.program_id(1)
    p = pl.program_id(2)

    @pl.when(p == 0)
    def _():
        sum_loss_ref[...] = jnp.zeros_like(sum_loss_ref)
        sum_valid_ref[...] = jnp.zeros_like(sum_valid_ref)

    pix_start = (c * n_inner + p) * pix_per_block
    loss, valid = _ce_block(logits_ref[...], tgt_ref[...], pix_start, total_p,
                            use_bf16_exp)
    sum_loss_ref[...] += loss.reshape(sum_loss_ref.shape)
    sum_valid_ref[...] += valid.reshape(sum_valid_ref.shape)


def _ce_pixel_kernel(logits_ref, tgt_ref, loss_ref, *,
                     pix_per_block, total_p, use_bf16_exp):
    """Per-pixel CE (0 where ignored), lane-dense output tile."""
    p = pl.program_id(1)
    loss, _ = _ce_block(logits_ref[...], tgt_ref[...], p * pix_per_block, total_p,
                        use_bf16_exp)
    loss_ref[...] = loss.reshape(loss_ref.shape)


# --------------------------------- tiling plan -----------------------------------
def _plan(pred_logits, gts, *, force_multi_block=False):
    N, C, H, W = pred_logits.shape
    P = H * W
    l_item = jnp.dtype(pred_logits.dtype).itemsize
    t_item = jnp.dtype(gts.dtype).itemsize

    cap = _vmem_capacity_bytes()
    vmem_limit = cap // 2                         # scoped VMEM we request
    usable = max(vmem_limit - (4 << 20), vmem_limit // 2)  # compiler headroom
    # total VMEM bytes per pixel: double-buffered logits + targets + f32 accums
    bytes_per_pixel = 2 * C * l_item + 2 * t_item + 24
    pix_budget = max(1024, usable // bytes_per_pixel)

    dense = (P % 128 == 0)
    if dense:
        S = P // 128
        s_tile = max(8, (pix_budget // 128 // 8) * 8)
        if s_tile >= S:
            s_tile = S
        if force_multi_block and N == 1 and s_tile == S and S >= 16:
            s_tile = max(8, (((S + 1) // 2) // 8) * 8)   # >=2 blocks for 2 v7x TCs
        logits = pred_logits.reshape(N, C, S, 128)
        tgt = gts.reshape(N, 1, S, 128)
        pix_block = (s_tile, 128)
        pix_full = (S, 128)
        n_pt = pl.cdiv(S, s_tile)

        def in_idx(n, b):
            return (n, 0, b, 0)
    else:
        tile_p = max(128, (pix_budget // 128) * 128)
        if tile_p >= P:
            tile_p = P
        if force_multi_block and N == 1 and tile_p == P and P >= 256:
            tile_p = max(128, (((P + 1) // 2) // 128) * 128)
        logits = pred_logits.reshape(N, C, P)
        tgt = gts.reshape(N, 1, P)
        pix_block = (tile_p,)
        pix_full = (P,)
        n_pt = pl.cdiv(P, tile_p)

        def in_idx(n, b):
            return (n, 0, b)

    pix_per_block = 1
    for d in pix_block:
        pix_per_block *= d

    return types.SimpleNamespace(
        N=N, C=C, P=P, n_pt=n_pt,
        logits=logits, tgt=tgt,
        logits_block=(None, C) + pix_block,
        tgt_block=(None, 1) + pix_block,
        pix_block=pix_block, pix_full=pix_full,
        pix_per_block=pix_per_block,
        in_idx=in_idx,
        vmem_limit=vmem_limit,
        use_bf16_exp=(jnp.dtype(pred_logits.dtype) == jnp.bfloat16
                      and _has_bf16_eup()),
    )


# ----------------------------------- wrappers ------------------------------------
def _ce_sums(pred_logits, gts):
    """Fused per-pixel CE partial sums: (sum of losses, number of valid pixels)."""
    plan = _plan(pred_logits, gts, force_multi_block=True)
    N, n_pt = plan.N, plan.n_pt
    n_chunk = 2 if n_pt >= 2 else 1
    n_inner = pl.cdiv(n_pt, n_chunk)

    kernel = functools.partial(
        _ce_sum_kernel, pix_per_block=plan.pix_per_block, total_p=plan.P,
        n_inner=n_inner, use_bf16_exp=plan.use_bf16_exp)

    in_idx = plan.in_idx
    max_b = n_pt - 1

    def in_map(n, c, p):
        # clamp redundant (chunk, inner) combinations onto a valid block; the
        # in-kernel out-of-bounds mask zeroes their contribution
        return in_idx(n, jnp.minimum(c * n_inner + p, max_b))

    acc_tail = plan.pix_block if len(plan.pix_block) == 2 else (1,) + plan.pix_block
    acc_shape = (N, n_chunk) + acc_tail
    acc_block = (None, None) + acc_tail

    def out_map(n, c, p):
        return (n, c, 0, 0)

    sum_loss, sum_valid = pl.pallas_call(
        kernel,
        out_shape=(jax.ShapeDtypeStruct(acc_shape, jnp.float32),
                   jax.ShapeDtypeStruct(acc_shape, jnp.float32)),
        grid=(N, n_chunk, n_inner),
        in_specs=[pl.BlockSpec(plan.logits_block, in_map),
                  pl.BlockSpec(plan.tgt_block, in_map)],
        out_specs=(pl.BlockSpec(acc_block, out_map),
                   pl.BlockSpec(acc_block, out_map)),
        compiler_params=pltpu.CompilerParams(
            dimension_semantics=("parallel", "parallel", "arbitrary"),
            vmem_limit_bytes=plan.vmem_limit),
    )(plan.logits, plan.tgt)
    return jnp.sum(sum_loss), jnp.sum(sum_valid)


def mean_cross_entropy(pred_logits, gts):
    """nn.CrossEntropyLoss(ignore_index=255, reduction='mean') equivalent."""
    total_loss, total_valid = _ce_sums(pred_logits, gts)
    # guard against all-ignored batches (PyTorch would return NaN here)
    return total_loss / jnp.maximum(total_valid, 1.0)


def per_pixel_cross_entropy(pred_logits, gts):
    """nn.CrossEntropyLoss(ignore_index=255, reduction='none') -> (N, H*W)."""
    plan = _plan(pred_logits, gts)
    N, P, n_pt = plan.N, plan.P, plan.n_pt

    kernel = functools.partial(
        _ce_pixel_kernel, pix_per_block=plan.pix_per_block, total_p=P,
        use_bf16_exp=plan.use_bf16_exp)

    in_idx = plan.in_idx
    out_shape = (N, 1) + plan.pix_full
    out_block = (None, 1) + plan.pix_block

    loss = pl.pallas_call(
        kernel,
        out_shape=jax.ShapeDtypeStruct(out_shape, jnp.float32),
        grid=(N, n_pt),
        in_specs=[pl.BlockSpec(plan.logits_block, lambda n, p: in_idx(n, p)),
                  pl.BlockSpec(plan.tgt_block, lambda n, p: in_idx(n, p))],
        out_specs=pl.BlockSpec(out_block, lambda n, p: in_idx(n, p)),
        compiler_params=pltpu.CompilerParams(
            dimension_semantics=("parallel", "parallel"),
            vmem_limit_bytes=plan.vmem_limit),
    )(plan.logits, plan.tgt)
    return loss.reshape(N, P)


class AddedCrossEntropyLoss:
    """JAX/Pallas port of Added_CrossEntropyLoss (no learnable parameters)."""

    def __init__(self, top_k_percent_pixels=None, hard_example_mining_step=100000):
        self.top_k_percent_pixels = top_k_percent_pixels
        if top_k_percent_pixels is not None:
            assert 0 < top_k_percent_pixels < 1
        self.hard_example_mining_step = hard_example_mining_step

    def __call__(self, dic_tmp, y, step):
        # TODO(synk): same-shape dict entries could be stacked into one
        # pallas_call (extra leading grid axis) to amortize launch cost.
        final_loss = jnp.float32(0.0)
        for seq_name in dic_tmp.keys():
            pred_logits = dic_tmp[seq_name]   # (N, C, H, W)
            gts = y[seq_name]                 # (N, H, W)
            N, C, H, W = pred_logits.shape

            if self.top_k_percent_pixels is None:
                final_loss = final_loss + mean_cross_entropy(pred_logits, gts)
            else:
                num_pixels = float(H * W)
                if self.hard_example_mining_step == 0:
                    top_k_pixels = int(self.top_k_percent_pixels * num_pixels)
                else:
                    ratio = min(1.0, step / float(self.hard_example_mining_step))
                    top_k_pixels = int(
                        (ratio * self.top_k_percent_pixels + (1.0 - ratio)) * num_pixels)

                if top_k_pixels >= int(num_pixels):
                    # top-k over ALL pixels == plain mean over N*P entries
                    # (ignored pixels carry loss 0, exactly as in torch); skip
                    # the O(P log P) sort and reuse the fused streaming sums.
                    total_loss, _ = _ce_sums(pred_logits, gts)
                    final_loss = final_loss + total_loss / (N * num_pixels)
                else:
                    # ignored pixels carry loss 0 but stay top-k candidates (as in torch)
                    pixel_losses = per_pixel_cross_entropy(pred_logits, gts)  # (N, H*W)
                    # TODO(synk): replace the full jax.lax.top_k sort with a fused
                    # threshold/histogram selection pass for large H*W.
                    top_k_loss, _ = jax.lax.top_k(pixel_losses, top_k_pixels)
                    final_loss = final_loss + jnp.mean(top_k_loss)
        return final_loss


# ----------------------- pure-JAX reference (for checking) -----------------------
def _ref_per_pixel(pred_logits, gts):
    N, C, H, W = pred_logits.shape
    lp = jnp.transpose(pred_logits, (0, 2, 3, 1)).reshape(N, H * W, C)
    lp = lp.astype(jnp.float32)
    t = gts.reshape(N, H * W).astype(jnp.int32)
    valid = t != IGNORE_INDEX
    lse = jax.nn.logsumexp(lp, axis=-1)
    tl = jnp.take_along_axis(lp, jnp.where(valid, t, 0)[..., None], axis=-1)[..., 0]
    return jnp.where(valid, lse - tl, 0.0), valid


if __name__ == "__main__":
    key = jax.random.PRNGKey(0)

    def make_case(k, N, C, H, W, dtype=jnp.float32):
        k1, k2, k3 = jax.random.split(k, 3)
        logits = jax.random.normal(k1, (N, C, H, W), dtype=jnp.float32).astype(dtype)
        gts = jax.random.randint(k2, (N, H, W), 0, C, dtype=jnp.int32)
        gts = jnp.where(jax.random.uniform(k3, (N, H, W)) < 0.1, IGNORE_INDEX, gts)
        return logits, gts

    ks = jax.random.split(key, 8)

    # case A: two sequences, dense layout (H*W % 128 == 0)
    logits_a, gts_a = make_case(ks[0], 2, 4, 16, 16)
    logits_b, gts_b = make_case(ks[1], 2, 4, 16, 16)
    dic_tmp = {"seq0": logits_a, "seq1": logits_b}
    y = {"seq0": gts_a, "seq1": gts_b}
    step = 50000

    loss_fn = AddedCrossEntropyLoss(top_k_percent_pixels=None)
    loss = jax.block_until_ready(loss_fn(dic_tmp, y, step))

    loss_fn_topk = AddedCrossEntropyLoss(top_k_percent_pixels=0.25,
                                         hard_example_mining_step=100000)
    loss_topk = jax.block_until_ready(loss_fn_topk(dic_tmp, y, step))
    loss_topk0 = jax.block_until_ready(loss_fn_topk(dic_tmp, y, 0))  # k == P path

    ref_mean = jnp.float32(0.0)
    ref_topk = jnp.float32(0.0)
    ref_topk0 = jnp.float32(0.0)
    ratio = min(1.0, step / 100000.0)
    k_pix = int((ratio * 0.25 + (1.0 - ratio)) * float(16 * 16))
    for name in dic_tmp:
        l_ref, v_ref = _ref_per_pixel(dic_tmp[name], y[name])
        ref_mean = ref_mean + jnp.sum(l_ref) / jnp.maximum(jnp.sum(v_ref), 1)
        tk, _ = jax.lax.top_k(l_ref, k_pix)
        ref_topk = ref_topk + jnp.mean(tk)
        ref_topk0 = ref_topk0 + jnp.mean(l_ref)

    assert jnp.isfinite(loss) and jnp.isfinite(loss_topk) and jnp.isfinite(loss_topk0)
    assert bool(jnp.allclose(loss, ref_mean, rtol=1e-5, atol=1e-5))
    assert bool(jnp.allclose(loss_topk, ref_topk, rtol=1e-5, atol=1e-5))
    assert bool(jnp.allclose(loss_topk0, ref_topk0, rtol=1e-5, atol=1e-5))

    # case B: flat-layout fallback (H*W not a multiple of 128)
    logits_c, gts_c = make_case(ks[2], 2, 5, 10, 10)
    loss_c = jax.block_until_ready(mean_cross_entropy(logits_c, gts_c))
    l_ref, v_ref = _ref_per_pixel(logits_c, gts_c)
    ref_c = jnp.sum(l_ref) / jnp.maximum(jnp.sum(v_ref), 1)
    assert bool(jnp.allclose(loss_c, ref_c, rtol=1e-5, atol=1e-5))

    # case C: N == 1 with several pixel blocks (exercises the chunked/clamped
    # accumulator grid used to keep both v7x TensorCores busy)
    logits_d, gts_d = make_case(ks[3], 1, 4, 48, 64)
    loss_d = jax.block_until_ready(mean_cross_entropy(logits_d, gts_d))
    l_ref, v_ref = _ref_per_pixel(logits_d, gts_d)
    ref_d = jnp.sum(l_ref) / jnp.maximum(jnp.sum(v_ref), 1)
    assert bool(jnp.allclose(loss_d, ref_d, rtol=1e-5, atol=1e-5))

    # case D: bf16 logits (bf16 exp path on v6e/v7x; looser tolerance)
    logits_e, gts_e = make_case(ks[4], 2, 4, 16, 16, dtype=jnp.bfloat16)
    loss_e = jax.block_until_ready(mean_cross_entropy(logits_e, gts_e))
    l_ref, v_ref = _ref_per_pixel(logits_e, gts_e)
    ref_e = jnp.sum(l_ref) / jnp.maximum(jnp.sum(v_ref), 1)
    assert jnp.isfinite(loss_e)
    assert bool(jnp.allclose(loss_e, ref_e, rtol=2e-2, atol=2e-2))

    print("KERNEL_OK")
</pallas_src>

<mosaic_0001>
module attributes {stable_mosaic.version = 11 : i64} {
  func.func @_ce_sum_kernel(%arg0: i32, %arg1: i32, %arg2: i32, %arg3: memref<1x4x2x128xf32, #tpu.memory_space<vmem>>, %arg4: memref<1x1x2x128xi32, #tpu.memory_space<vmem>>, %arg5: memref<1x1x2x128xf32, #tpu.memory_space<vmem>>, %arg6: memref<1x1x2x128xf32, #tpu.memory_space<vmem>>) attributes {dimension_semantics = [#tpu.dimension_semantics<parallel>, #tpu.dimension_semantics<parallel>, #tpu.dimension_semantics<arbitrary>], iteration_bounds = array<i64: 2, 1, 1>, scalar_prefetch = 0 : i64, scratch_operands = 0 : i64, tpu.core_type = #tpu.core_type<tc>, window_params = [{transform_indices = @transform_0, window_bounds = array<i64: 1, 4, 2, 128>}, {transform_indices = @transform_1, window_bounds = array<i64: 1, 1, 2, 128>}, {transform_indices = @transform_2, window_bounds = array<i64: 1, 1, 2, 128>}, {transform_indices = @transform_3, window_bounds = array<i64: 1, 1, 2, 128>}]} {
    %c0_i32 = arith.constant 0 : i32
    %0 = arith.cmpi eq, %arg2, %c0_i32 : i32
    %1 = arith.extui %0 : i1 to i32
    %c0_i32_0 = arith.constant 0 : i32
    %2 = arith.cmpi ne, %1, %c0_i32_0 : i32
    scf.if %2 {
      %cst_30 = arith.constant 0.000000e+00 : f32
      %60 = vector.broadcast %cst_30 : f32 to vector<2x128xf32>
      %c0_31 = arith.constant 0 : index
      %c0_32 = arith.constant 0 : index
      %c0_33 = arith.constant 0 : index
      %c0_34 = arith.constant 0 : index
      %61 = vector.load %arg5[%c0_31, %c0_32, %c0_33, %c0_34] : memref<1x1x2x128xf32, #tpu.memory_space<vmem>>, vector<1x1x2x128xf32>
      %62 = vector.shape_cast %61 : vector<1x1x2x128xf32> to vector<2x128xf32>
      %63 = vector.shape_cast %60 : vector<2x128xf32> to vector<1x1x2x128xf32>
      tpu.vector_store %arg5[%c0_31, %c0_32, %c0_33, %c0_34], %63 {strides = array<i32>} : memref<1x1x2x128xf32, #tpu.memory_space<vmem>>, vector<1x1x2x128xf32>,
      %cst_35 = arith.constant 0.000000e+00 : f32
      %64 = vector.broadcast %cst_35 : f32 to vector<2x128xf32>
      %c0_36 = arith.constant 0 : index
      %c0_37 = arith.constant 0 : index
      %c0_38 = arith.constant 0 : index
      %c0_39 = arith.constant 0 : index
      %65 = vector.load %arg6[%c0_36, %c0_37, %c0_38, %c0_39] : memref<1x1x2x128xf32, #tpu.memory_space<vmem>>, vector<1x1x2x128xf32>
      %66 = vector.shape_cast %65 : vector<1x1x2x128xf32> to vector<2x128xf32>
      %67 = vector.shape_cast %64 : vector<2x128xf32> to vector<1x1x2x128xf32>
      tpu.vector_store %arg6[%c0_36, %c0_37, %c0_38, %c0_39], %67 {strides = array<i32>} : memref<1x1x2x128xf32, #tpu.memory_space<vmem>>, vector<1x1x2x128xf32>,
    } else {
    }
    %c1_i32 = arith.constant 1 : i32
    %3 = arith.muli %arg1, %c1_i32 : i32
    %4 = arith.addi %3, %arg2 : i32
    %c256_i32 = arith.constant 256 : i32
    %5 = arith.muli %4, %c256_i32 : i32
    %c0 = arith.constant 0 : index
    %c0_1 = arith.constant 0 : index
    %c0_2 = arith.constant 0 : index
    %c0_3 = arith.constant 0 : index
    %6 = vector.load %arg3[%c0, %c0_1, %c0_2, %c0_3] : memref<1x4x2x128xf32, #tpu.memory_space<vmem>>, vector<1x4x2x128xf32>
    %7 = vector.shape_cast %6 : vector<1x4x2x128xf32> to vector<4x2x128xf32>
    %c0_4 = arith.constant 0 : index
    %c0_5 = arith.constant 0 : index
    %c0_6 = arith.constant 0 : index
    %c0_7 = arith.constant 0 : index
    %8 = vector.load %arg4[%c0_4, %c0_5, %c0_6, %c0_7] : memref<1x1x2x128xi32, #tpu.memory_space<vmem>>, vector<1x1x2x128xi32>
    %9 = vector.shape_cast %8 : vector<1x1x2x128xi32> to vector<1x2x128xi32>
    %cst = arith.constant dense<0xFF800000> : vector<2x128xf32>
    %10 = vector.multi_reduction <maximumf>, %7, %cst [0] : vector<4x2x128xf32> to vector<2x128xf32>
    %11 = vector.shape_cast %10 : vector<2x128xf32> to vector<1x2x128xf32>
    %12 = vector.broadcast %11 : vector<1x2x128xf32> to vector<4x2x128xf32>
    %13 = arith.subf %7, %12 : vector<4x2x128xf32>
    %14 = math.exp %13 : vector<4x2x128xf32>
    %cst_8 = arith.constant dense<0.000000e+00> : vector<2x128xf32>
    %15 = vector.multi_reduction <add>, %14, %cst_8 [0] : vector<4x2x128xf32> to vector<2x128xf32>
    %16 = vector.shape_cast %15 : vector<2x128xf32> to vector<1x2x128xf32>
    %17 = math.log %16 : vector<1x2x128xf32>
    %18 = arith.addf %11, %17 : vector<1x2x128xf32>
    %19 = tpu.iota {dimensions = array<i32: 0>} : vector<4x2x128xi32>
    %20 = vector.broadcast %9 : vector<1x2x128xi32> to vector<4x2x128xi32>
    %21 = arith.cmpi eq, %19, %20 : vector<4x2x128xi32>
    %c0_i32_9 = arith.constant 0 : i32
    %22 = arith.sitofp %c0_i32_9 : i32 to f32
    %23 = vector.broadcast %22 : f32 to vector<4x2x128xf32>
    %24 = arith.select %21, %7, %23 : vector<4x2x128xi1>, vector<4x2x128xf32>
    %cst_10 = arith.constant dense<0.000000e+00> : vector<2x128xf32>
    %25 = vector.multi_reduction <add>, %24, %cst_10 [0] : vector<4x2x128xf32> to vector<2x128xf32>
    %26 = vector.shape_cast %25 : vector<2x128xf32> to vector<1x2x128xf32>
    %27 = tpu.iota {dimensions = array<i32: 2>} : vector<1x2x128xi32>
    %c1_i32_11 = arith.constant 1 : i32
    %28 = vector.broadcast %c1_i32_11 : i32 to vector<1x2x128xi32>
    %29 = arith.muli %27, %28 : vector<1x2x128xi32>
    %30 = tpu.iota {dimensions = array<i32: 1>} : vector<1x2x128xi32>
    %c128_i32 = arith.constant 128 : i32
    %31 = vector.broadcast %c128_i32 : i32 to vector<1x2x128xi32>
    %32 = arith.muli %30, %31 : vector<1x2x128xi32>
    %33 = arith.addi %29, %32 : vector<1x2x128xi32>
    %34 = vector.broadcast %5 : i32 to vector<1x2x128xi32>
    %35 = arith.addi %34, %33 : vector<1x2x128xi32>
    %c256_i32_12 = arith.constant 256 : i32
    %36 = vector.broadcast %c256_i32_12 : i32 to vector<1x2x128xi32>
    %37 = arith.cmpi slt, %35, %36 : vector<1x2x128xi32>
    %c255_i32 = arith.constant 255 : i32
    %38 = vector.broadcast %c255_i32 : i32 to vector<1x2x128xi32>
    %39 = arith.cmpi ne, %9, %38 : vector<1x2x128xi32>
    %40 = arith.andi %39, %37 : vector<1x2x128xi1>
    %41 = arith.subf %18, %26 : vector<1x2x128xf32>
    %cst_13 = arith.constant 0.000000e+00 : f32
    %42 = vector.broadcast %cst_13 : f32 to vector<1x2x128xf32>
    %43 = arith.select %40, %41, %42 : vector<1x2x128xi1>, vector<1x2x128xf32>
    %44 = arith.extui %40 : vector<1x2x128xi1> to vector<1x2x128xi32>
    %45 = arith.sitofp %44 : vector<1x2x128xi32> to vector<1x2x128xf32>
    %c0_14 = arith.constant 0 : index
    %c0_15 = arith.constant 0 : index
    %c0_16 = arith.constant 0 : index
    %c0_17 = arith.constant 0 : index
    %46 = vector.load %arg5[%c0_14, %c0_15, %c0_16, %c0_17] : memref<1x1x2x128xf32, #tpu.memory_space<vmem>>, vector<1x1x2x128xf32>
    %47 = vector.shape_cast %46 : vector<1x1x2x128xf32> to vector<2x128xf32>
    %48 = vector.shape_cast %43 : vector<1x2x128xf32> to vector<2x128xf32>
    %49 = arith.addf %47, %48 : vector<2x128xf32>
    %c0_18 = arith.constant 0 : index
    %c0_19 = arith.constant 0 : index
    %c0_20 = arith.constant 0 : index
    %c0_21 = arith.constant 0 : index
    %50 = vector.load %arg5[%c0_18, %c0_19, %c0_20, %c0_21] : memref<1x1x2x128xf32, #tpu.memory_space<vmem>>, vector<1x1x2x128xf32>
    %51 = vector.shape_cast %50 : vector<1x1x2x128xf32> to vector<2x128xf32>
    %52 = vector.shape_cast %49 : vector<2x128xf32> to vector<1x1x2x128xf32>
    tpu.vector_store %arg5[%c0_18, %c0_19, %c0_20, %c0_21], %52 {strides = array<i32>} : memref<1x1x2x128xf32, #tpu.memory_space<vmem>>, vector<1x1x2x128xf32>,
    %c0_22 = arith.constant 0 : index
    %c0_23 = arith.constant 0 : index
    %c0_24 = arith.constant 0 : index
    %c0_25 = arith.constant 0 : index
    %53 = vector.load %arg6[%c0_22, %c0_23, %c0_24, %c0_25] : memref<1x1x2x128xf32, #tpu.memory_space<vmem>>, vector<1x1x2x128xf32>
    %54 = vector.shape_cast %53 : vector<1x1x2x128xf32> to vector<2x128xf32>
    %55 = vector.shape_cast %45 : vector<1x2x128xf32> to vector<2x128xf32>
    %56 = arith.addf %54, %55 : vector<2x128xf32>
    %c0_26 = arith.constant 0 : index
    %c0_27 = arith.constant 0 : index
    %c0_28 = arith.constant 0 : index
    %c0_29 = arith.constant 0 : index
    %57 = vector.load %arg6[%c0_26, %c0_27, %c0_28, %c0_29] : memref<1x1x2x128xf32, #tpu.memory_space<vmem>>, vector<1x1x2x128xf32>
    %58 = vector.shape_cast %57 : vector<1x1x2x128xf32> to vector<2x128xf32>
    %59 = vector.shape_cast %56 : vector<2x128xf32> to vector<1x1x2x128xf32>
    tpu.vector_store %arg6[%c0_26, %c0_27, %c0_28, %c0_29], %59 {strides = array<i32>} : memref<1x1x2x128xf32, #tpu.memory_space<vmem>>, vector<1x1x2x128xf32>,
    return
  }
  func.func @transform_0(%arg0: i32, %arg1: i32, %arg2: i32) -> (i32, i32, i32, i32) {
    %c1_i32 = arith.constant 1 : i32
    %0 = arith.muli %arg1, %c1_i32 : i32
    %1 = arith.addi %0, %arg2 : i32
    %c0_i32 = arith.constant 0 : i32
    %2 = arith.minsi %1, %c0_i32 : i32
    %c0_i32_0 = arith.constant 0 : i32
    %c0_i32_1 = arith.constant 0 : i32
    %c0_i32_2 = arith.constant 0 : i32
    return %arg0, %c0_i32_0, %2, %c0_i32_1 : i32, i32, i32, i32
  }
  func.func @transform_1(%arg0: i32, %arg1: i32, %arg2: i32) -> (i32, i32, i32, i32) {
    %c1_i32 = arith.constant 1 : i32
    %0 = arith.muli %arg1, %c1_i32 : i32
    %1 = arith.addi %0, %arg2 : i32
    %c0_i32 = arith.constant 0 : i32
    %2 = arith.minsi %1, %c0_i32 : i32
    %c0_i32_0 = arith.constant 0 : i32
    %c0_i32_1 = arith.constant 0 : i32
    %c0_i32_2 = arith.constant 0 : i32
    return %arg0, %c0_i32_0, %2, %c0_i32_1 : i32, i32, i32, i32
  }
  func.func @transform_2(%arg0: i32, %arg1: i32, %arg2: i32) -> (i32, i32, i32, i32) {
    %c0_i32 = arith.constant 0 : i32
    %c0_i32_0 = arith.constant 0 : i32
    %c0_i32_1 = arith.constant 0 : i32
    return %arg0, %arg1, %c0_i32, %c0_i32_0 : i32, i32, i32, i32
  }
  func.func @transform_3(%arg0: i32, %arg1: i32, %arg2: i32) -> (i32, i32, i32, i32) {
    %c0_i32 = arith.constant 0 : i32
    %c0_i32_0 = arith.constant 0 : i32
    %c0_i32_1 = arith.constant 0 : i32
    return %arg0, %arg1, %c0_i32, %c0_i32_0 : i32, i32, i32, i32
  }
}

</mosaic_0001>

<bundles_post_ra>
// kernel: tpu_custom_call.1
= control target key start
LH: loop header
LB: loop body
LE: loop exit
PB: predicated region body
PF: predicated region fallthrough
CT: control target
= control target key end

     0   :  { %s1110_s0 = inlined_call_operand.hbm [shape: f32[2,4,2,128], index: 0, kind: input, shape index: {}]   ;;  %s1111_s1 = inlined_call_operand.hbm [shape: s32[2,1,2,128], index: 1, kind: input, shape index: {}]   ;;  %s1112_s2 = inlined_call_operand.hbm [shape: f32[2,1,2,128], index: 2, kind: output, shape index: {0}]   ;;  %s1113_s3 = inlined_call_operand.hbm [shape: f32[2,1,2,128], index: 3, kind: output, shape index: {1}]  }
   0x1   :  { %1114 = sst [smem:[#allocation14_spill]] %s1110_s0 }
   0x2   :  { %9 = vsyncpa [#allocation3], 0 }
   0x3   :  { %11 = vsyncpa [#allocation3 + $0x1], 0 }
   0x4   :  { %12 = vsyncpa [#allocation6], 0 }
   0x5   :  { %14 = vsyncpa [#allocation6 + $0x1], 0 }
   0x6   :  { %15 = vsyncpa [#allocation4], 0 }
   0x7   :  { %17 = vsyncpa [#allocation4 + $0x1], 0 }
   0x8   :  { %18 = vsyncpa [#allocation9], 0 }
   0x9   :  { %20 = vsyncpa [#allocation9 + $0x1], 0  ;;  %s850_s12 = smov 0   ;;  %s852_s13 = smov 0  }
   0xa   :  { %s854_s14 = smov 0   ;;  %s856_s15 = smov 0  }
   0xb   :  { %s858_s16 = smov 0   ;;  %s860_s17 = smov 0  }
   0xc LB: > { %s544_s18 = sadd.s32 4294967295, %s821_s17   ;;  %s545_s19 = sadd.s32 4294967294, %s821_s17   ;;  %s821_s17 = sphi %s860_s17, %s26_s17   ;;  %s817_s16 = sphi %s858_s16, %s1129_s16   ;;  %s813_s15 = sphi %s856_s15, %s1128_s15   ;;  %s809_s14 = sphi %s854_s14, %s1127_s14   ;;  %s805_s13 = sphi %s852_s13, %s1126_s13   ;;  %s801_s12 = sphi %s850_s12, %s1125_s12  }
   0xd   : > { %s45_s20 = sadd.s32 1, %s817_s16  ;;  %s60_s21 = sadd.s32 1, %s809_s14 }
   0xe   : > { %p47_p0 = scmp.ge.s32.totalorder %s45_s20, 2  ;;  %p67_p1 = scmp.ne.s32.totalorder %s809_s14, %s805_s13 }
   0xf   : > { %p68_p2 = scmp.eq.s32.totalorder %s821_s17, 0  ;;  %p73_p3 = scmp.ne.s32.totalorder %s805_s13, %s801_s12 }
  0x10   : > { %s1131_s20 = smov (%p47_p0, %s45_s20), 0  ;;  %p74_p5 = scmp.eq.s32.totalorder %s544_s18, 0 }
  0x11   : > { %p891_p4 = por %p68_p2, %p67_p1  ;;  %s55_s23 = ssub.s32 %s817_s16, %s1131_s20 }
  0x12   : > { %p133_p6 = scmp.eq.s32.totalorder %s544_s18, 1  ;;  %p58_p7 = scmp.eq.s32.totalorder %s55_s23, 0 }
  0x13   : > { %p897_p8 = por %p74_p5, %p73_p3  ;;  %p139_p10 = scmp.eq.s32.totalorder %s545_s19, 1 }
  0x14   : > { %p901_p9 = por %p133_p6, %p67_p1  ;;  %p588_p13 = scmp.lt.s32.totalorder %s821_s17, 2 }
  0x15   : > { %s906_s26 = scalar_select %p58_p7, %s809_s14, %s60_s21  }
  0x16   : > { %p908_p11 = por %p139_p10, %p73_p3  ;;  %s915_s28 = sand.u32 1, %s809_s14  }
  0x17   : > { %s548_s29 = sshll.u32 %s915_s28, 3  ;;  %s565_s30 = sshll.u32 %s817_s16, 7 }
  0x18   : > { %s1119_s0 = sld [smem:[#allocation14_spill]]  ;;  %s191_s7 = scalar_lea.vmem [#allocation2], %s548_s29 }
  0x19   : > { %s202_s8 = sshll.u32 %s191_s7, 4  ;;  %p924_p0 = pnand %p588_p13, %p891_p4  ;;  %s203_s8 = int_to_ptr.vmem [resolvable:$true] %s202_s8 }
  0x1a   : > { %p553_p1 = scmp.ge.s32.totalorder %s821_s17, 1  ;;  %s188_s10 = scalar_lea.sflag [#allocation3], %s915_s28 }
  0x1b   : > { %p653_p2 = pneg %p924_p0  ;;  %s664_s11 = scalar_lea.vmem %s203_s8, 128 }
  0x1c   : > { %p665_p3 = scmp.ne.s32.totalorder %s203_s8, %s664_s11  ;;  %s823_s18 = smov [#allocation2]  }
  0x1d   : > { %s669_s19 = sshll.u32 %s823_s18, 4  ;;  %s670_s19 = int_to_ptr.vmem [resolvable:$false] %s669_s19 }
  0x1e   : > { %s201_s6 = scalar_lea.hbm %s1119_s0, %s565_s30  ;;  %p667_p5 = pnand %p665_p3, %p653_p2 }
  0x1f   : > { %s671_s21 = scalar_lea.vmem %s670_s19, 256  ;;  %p672_p4 = scmp.lt.s32.totalorder %s203_s8, %s670_s19 }
  0x20   : > { %p668_p6 = pneg %p667_p5  ;;  %p673_p7 = scmp.lt.s32.totalorder %s671_s21, %s664_s11 }
  0x22   : > { %p674_p10 = por %p673_p7, %p672_p4 }
  0x24   : > { %p675_p13 = pnand %p674_p10, %p668_p6 }
  0x26   : > { %678 = shalt.err (!%p675_p13)
}
  0x27   : > { %s824_s22 = smov 32   ;;  %s825_s23 = smov 2  }
  0x28   : > { %577 = dma.hbm_to_vmem [thread:$0]  (!%p924_p0), %s201_s6, 128, %s203_s8, %s188_s10, %s824_s22, %s824_s22, %s825_s23  }
  0x29   : > { %p232_p3 = scmp.lt.s32.totalorder %s821_s17, 3  ;;  %s551_s29 = sshll.u32 %s915_s28, 1 }
  0x2a   : > { %s552_s30 = sshll.u32 %s817_s16, 5  ;;  %s216_s18 = scalar_lea.vmem [#allocation5], %s551_s29 }
  0x2b   : > { %p942_p5 = pnand %p553_p1, %p232_p3  ;;  %s225_s11 = scalar_lea.hbm %s1111_s1, %s552_s30 }
  0x2c   : > { %s227_s19 = sshll.u32 %s216_s18, 4  ;;  %s213_s21 = scalar_lea.sflag [#allocation6], %s915_s28  ;;  %s228_s19 = int_to_ptr.vmem [resolvable:$true] %s227_s19 }
  0x2d   : > { %s692_s0 = scalar_lea.vmem %s228_s19, 32  ;;  %s826_s6 = smov [#allocation5]  }
  0x2e   : > { %p693_p6 = scmp.ne.s32.totalorder %s228_s19, %s692_s0  ;;  %s697_s8 = sshll.u32 %s826_s6, 4  ;;  %s698_s8 = int_to_ptr.vmem [resolvable:$false] %s697_s8 }
  0x2f   : > { %s699_s10 = scalar_lea.vmem %s698_s8, 64  ;;  %p700_p1 = scmp.lt.s32.totalorder %s228_s19, %s698_s8 }
  0x30   : > { %p695_p4 = pnand %p693_p6, %p653_p2  ;;  %p701_p10 = scmp.lt.s32.totalorder %s699_s10, %s692_s0 }
  0x32   : > { %p696_p7 = pneg %p695_p4  ;;  %p702_p13 = por %p701_p10, %p700_p1 }
  0x34   : > { %p703_p3 = pnand %p702_p13, %p696_p7 }
  0x36   : > { %706 = shalt.err (!%p703_p3)
}
  0x37   : > { %580 = dma.hbm_to_vmem [thread:$0]  (!%p924_p0), %s225_s11, 32, %s228_s19, %s213_s21  }
  0x38   : > { %236 = sbr.rel (%p942_p5) target bundleno = 146 (0x92), region = 28  ;;  %s958_s28 = sand.u32 (!%p942_p5), 1, %s805_s13  }
  0x39   : > { %s554_s22 = sshll.u32 (!%p942_p5), %s958_s28, 3  ;;  %s239_s23 = scalar_lea.sflag (!%p942_p5), [#allocation3], %s958_s28 }
  0x3a   : > { %s242_s29 = scalar_lea.vmem (!%p942_p5), [#allocation2], %s554_s22 }
  0x3d   : > { %784 = dma.done.wait (%p897_p8), %s239_s23, 128  }
  0x3e   : > { %786 = vsyncadd (%p897_p8), %s239_s23, 4294967168  ;;  %s555_s0 = sshll.u32 %s958_s28, 1  ;;  %s248_s9 = scalar_lea.sflag [#allocation6], %s958_s28 }
  0x3f   : > { %s251_s30 = scalar_lea.vmem [#allocation5], %s555_s0 }
  0x40   : > { %788 = dma.done.wait (%p897_p8), %s248_s9, 32  }
  0x41   : > { %790 = vsyncadd (%p897_p8), %s248_s9, 4294967264  ;;  %v348_v0 = vlaneseq  ;;  %s972_s4 = scalar_lea.vmem [#allocation7], %s555_s0  ;;  %v827_v1 = vmov 0.0   ;;  %s975_s5 = scalar_lea.vmem [#allocation8], %s555_s0  ;;  %vm303_vm0 = vcmask 1041408  }
  0x42   : > { %294 = vst [vmem:[%s972_s4] sm:$0x3] %v827_v1  ;;  %295 = vst [vmem:[%s975_s5] sm:$0x3] %v827_v1  ;;  %v978_v5 = vld [vmem:[%s242_s29] sm:$0x3]  ;;  %v980_v6 = vld [vmem:[%s242_s29 + $0x2] sm:$0x3] }
  0x43   : > { %v351_v2 = vshrl.u32 %v348_v0, 7  ;;  %v349_v3 = vand.u32 127, %v348_v0  ;;  %v982_v7 = vld [vmem:[%s242_s29 + $0x4] sm:$0x3]  ;;  %v984_v8 = vld [vmem:[%s242_s29 + $0x6] sm:$0x3] }
  0x44   : > { %v304_v9 = vsel %vm303_vm0, %v978_v5, -inf  ;;  %v305_v10 = vsel %vm303_vm0, %v980_v6, -inf  ;;  %v306_v11 = vsel %vm303_vm0, %v982_v7, -inf  ;;  %v307_v12 = vsel %vm303_vm0, %v984_v8, -inf  ;;  %v994_v16 = vld [vmem:[%s251_s30] sm:$0x3] }
  0x45   : > { %v352_v4 = vmul.u32 128, %v351_v2  ;;  %v308_v13 = vmax.f32 %v304_v9, %v305_v10  ;;  %v309_v15 = vmax.f32 %v306_v11, %v307_v12  ;;  %vm357_vm2 = vcmp.ne.s32.totalorder %v994_v16, 255  ;;  %s561_s24 = sshll.u32 %s813_s15, 5  ;;  %s403_s7 = sshll.u32 %s975_s5, 4  ;;  %s1023_s7 = int_to_ptr.vmem [resolvable:$true] %s403_s7 }
  0x46   : > { %s1021_s19 = scalar_lea.hbm %s1113_s3, %s561_s24  ;;  %s375_s21 = scalar_lea.sflag [#allocation9], %s958_s28 }
  0x47   : > { %v353_v14 = vadd.s32 %v352_v4, %v349_v3  ;;  %v996_v17 = vmax.f32 %v308_v13, %v309_v15  ;;  %s707_s6 = scalar_lea.vmem %s1023_s7, 32  ;;  %s828_s8 = smov [#allocation8]  }
  0x48   : > { %p708_p8 = scmp.ne.s32.totalorder %s1023_s7, %s707_s6  ;;  %s711_s10 = sshll.u32 %s828_s8, 4  ;;  %s712_s10 = int_to_ptr.vmem [resolvable:$false] %s711_s10 }
  0x49   : > { %vm356_vm1 = vcmp.lt.s32.totalorder %v353_v14, 256  ;;  %v366_v18 = vld [vmem:[%s975_s5] sm:$0x3]  ;;  %v311_v19 = vsub.f32 %v978_v5, %v996_v17  ;;  %v312_v20 = vsub.f32 %v980_v6, %v996_v17  ;;  %v313_v21 = vsub.f32 %v982_v7, %v996_v17  ;;  %s713_s22 = scalar_lea.vmem %s712_s10, 64  ;;  %p714_p5 = scmp.lt.s32.totalorder %s1023_s7, %s712_s10 }
  0x4a   : > { %v314_v22 = vsub.f32 %v984_v8, %v996_v17  ;;  %vm1010_vm3 = vmand %vm357_vm2, %vm356_vm1  ;;  %p709_p0 = pnand %p708_p8, %p901_p9  ;;  %p715_p6 = scmp.lt.s32.totalorder %s713_s22, %s707_s6 }
  0x4b   : > { %v558_v24 = vsel %vm1010_vm3, 1.0, %v827_v1  ;;  %v315_v25 = vmul.f32 1.442695, %v311_v19  ;;  %v317_v26 = vmul.f32 1.442695, %v312_v20 }
  0x4c   : > { %v319_v27 = vmul.f32 1.442695, %v313_v21  ;;  %v367_v28 = vadd.f32 %v558_v24, %v366_v18  ;;  %v321_v29 = vmul.f32 1.442695, %v314_v22  ;;  %p710_p2 = pneg %p709_p0  ;;  %p716_p4 = por %p715_p6, %p714_p5 }
  0x4d   : > { %641 = vpow2.f32 %v315_v25 }
  0x4e   : > { %368 = vst [vmem:[%s975_s5] sm:$0x3] %v367_v28  ;;  %643 = vpow2.f32 %v317_v26  ;;  %p717_p7 = pnand %p716_p4, %p710_p2 }
  0x50   : > { %720 = shalt.err (!%p717_p7)
}
  0x51   : > { %s721_s23 = scalar_lea.hbm %s1021_s19, 32  ;;  %s725_s9 = scalar_lea.hbm %s1113_s3, 64 }
  0x52   : > { %p722_p1 = scmp.ne.s32.totalorder %s1021_s19, %s721_s23  ;;  %p726_p3 = scmp.lt.s32.totalorder %s1021_s19, %s1113_s3 }
  0x53   : > { %p727_p8 = scmp.lt.s32.totalorder %s725_s9, %s721_s23 }
  0x54   : > { %p723_p10 = pnand %p722_p1, %p901_p9 }
  0x55   : > { %p728_p0 = por %p727_p8, %p726_p3 }
  0x56   : > { %p724_p13 = pneg %p723_p10 }
  0x58   : > { %p729_p2 = pnand %p728_p0, %p724_p13 }
  0x5a   : > { %732 = shalt.err (!%p729_p2)
}
  0x5b   : > { %571 = dma.vmem_to_hbm [thread:$0]  (%p901_p9), %s1023_s7, 32, %s1021_s19, %s375_s21   ;;  %645 = vpow2.f32 %v319_v27  ;;  %v642_v30 = vpop.eup %641  ;;  %vm333_vm4 = vcmp.eq.s32.totalorder %v994_v16, 0  ;;  %vm334_vm5 = vcmp.eq.s32.totalorder %v994_v16, 1  ;;  %vm335_vm6 = vcmp.eq.s32.totalorder %v994_v16, 2  ;;  %v363_v56 = vld [vmem:[%s972_s4] sm:$0x3] }
  0x5c   : > { %647 = vpow2.f32 %v321_v29  ;;  %v644_v31 = vpop.eup %643  ;;  %v323_v32 = vsel %vm303_vm0, %v642_v30, 0.0  ;;  %v337_v41 = vsel %vm333_vm4, %v978_v5, 0.0  ;;  %v338_v42 = vsel %vm334_vm5, %v980_v6, 0.0  ;;  %s389_s7 = sshll.u32 %s972_s4, 4  ;;  %s387_s19 = scalar_lea.hbm %s1112_s2, %s561_s24  ;;  %s390_s7 = int_to_ptr.vmem [resolvable:$true] %s389_s7 }
  0x5d   : > { %v324_v34 = vsel %vm303_vm0, %v644_v31, 0.0  ;;  %v341_v43 = vsel %vm303_vm0, %v337_v41, 0.0  ;;  %v342_v44 = vsel %vm303_vm0, %v338_v42, 0.0  ;;  %v339_v45 = vsel %vm335_vm6, %v982_v7, 0.0  ;;  %s370_s21 = scalar_lea.sflag [#allocation4], %s958_s28  ;;  %s733_s6 = scalar_lea.vmem %s390_s7, 32 }
  0x5e   : > { %v325_v36 = vadd.f32 %v324_v34, %v323_v32  ;;  %vm336_vm7 = vcmp.eq.s32.totalorder %v994_v16, 3  ;;  %v343_v46 = vadd.f32 %v342_v44, %v341_v43  ;;  %v344_v47 = vsel %vm303_vm0, %v339_v45, 0.0  ;;  %p734_p5 = scmp.ne.s32.totalorder %s390_s7, %s733_s6  ;;  %s829_s8 = smov [#allocation7]  }
  0x5f   : > { %v340_v48 = vsel %vm336_vm7, %v984_v8, 0.0  ;;  %s737_s10 = sshll.u32 %s829_s8, 4  ;;  %s738_s10 = int_to_ptr.vmem [resolvable:$false] %s737_s10 }
  0x60   : > { %v345_v49 = vadd.f32 %v344_v47, %v343_v46  ;;  %v346_v50 = vsel %vm303_vm0, %v340_v48, 0.0  ;;  %p735_p6 = pnand %p734_p5, %p901_p9  ;;  %s739_s22 = scalar_lea.vmem %s738_s10, 64 }
  0x61   : > { %p740_p7 = scmp.lt.s32.totalorder %s390_s7, %s738_s10  ;;  %p741_p1 = scmp.lt.s32.totalorder %s739_s22, %s733_s6 }
  0x62   : > { %v347_v53 = vadd.f32 %v346_v50, %v345_v49  ;;  %p736_p4 = pneg %p735_p6 }
  0x63   : > { %p742_p10 = por %p741_p1, %p740_p7 }
  0x65   : > { %p743_p13 = pnand %p742_p10, %p736_p4 }
  0x68   : > { %v646_v33 = vpop.eup %645 }
  0x69   : > { %v648_v35 = vpop.eup %647  ;;  %v326_v37 = vsel %vm303_vm0, %v646_v33, 0.0 }
  0x6a   : > { %v328_v38 = vsel %vm303_vm0, %v648_v35, 0.0  ;;  %v327_v39 = vadd.f32 %v326_v37, %v325_v36 }
  0x6c   : > { %v329_v40 = vadd.f32 %v328_v38, %v327_v39 }
  0x6e   : > { %649 = vlog2.f32 %v329_v40 }
  0x7b   : > { %v650_v51 = vpop.eup %649 }
  0x7c   : > { %v331_v52 = vmul.f32 0.6931472, %v650_v51 }
  0x7e   : > { %v332_v54 = vadd.f32 %v331_v52, %v996_v17 }
  0x80   : > { %v359_v55 = vsub.f32 %v332_v54, %v347_v53 }
  0x82   : > { %v360_v57 = vsel %vm1010_vm3, %v359_v55, 0.0 }
  0x83   : > { %v364_v58 = vadd.f32 %v363_v56, %v360_v57 }
  0x85   : > { %365 = vst [vmem:[%s972_s4] sm:$0x3] %v364_v58 }
  0x86   : > { %746 = shalt.err (!%p743_p13)
}
  0x87   : > { %s747_s15 = scalar_lea.hbm %s387_s19, 32  ;;  %s751_s24 = scalar_lea.hbm %s1112_s2, 64 }
  0x88   : > { %p748_p3 = scmp.ne.s32.totalorder %s387_s19, %s747_s15  ;;  %p752_p2 = scmp.lt.s32.totalorder %s387_s19, %s1112_s2 }
  0x89   : > { %p753_p5 = scmp.lt.s32.totalorder %s751_s24, %s747_s15 }
  0x8a   : > { %p749_p8 = pnand %p748_p3, %p901_p9 }
  0x8b   : > { %p754_p6 = por %p753_p5, %p752_p2 }
  0x8c   : > { %p750_p0 = pneg %p749_p8 }
  0x8e   : > { %p755_p12 = pnand %p754_p6, %p750_p0 }
  0x90   : > { %758 = shalt.err (!%p755_p12)
}
  0x91   : > { %570 = dma.vmem_to_hbm [thread:$0]  (%p901_p9), %s390_s7, 32, %s387_s19, %s370_s21  }
  0x92 PF: > { %s415_s0 = sand.u32 1, %s801_s12   ;;  %p1124_p4 = scmp.ge.s32.totalorder %s821_s17, 2 }
  0x93   : > { %s416_s9 = scalar_lea.sflag [#allocation4], %s415_s0 }
  0x94   : > { %p582_p7 = pnand %p1124_p4, %p908_p11 }
  0x96   : > { %p583_p1 = pneg %p582_p7 }
  0x98   : > { %792 = dma.done.wait (%p583_p1), %s416_s9, 32  }
  0x99   : > { %794 = vsyncadd (%p583_p1), %s416_s9, 4294967264  ;;  %s425_s30 = scalar_lea.sflag [#allocation9], %s415_s0 }
  0x9a   : > { %796 = dma.done.wait (%p583_p1), %s425_s30, 32  }
  0x9b   : > { %798 = vsyncadd (%p583_p1), %s425_s30, 4294967264  ;;  %s26_s17 = sadd.s32 1, %s821_s17   ;;  %s1125_s12 = smov %s805_s13 }
  0x9c   : > { %p23_p12 = scmp.ge.s32.totalorder %s26_s17, 4   ;;  %s1126_s13 = smov %s809_s14 }
  0x9d   : > { %s1127_s14 = smov %s906_s26  ;;  %s1128_s15 = smov %s817_s16 }
  0x9e   : > { %s1129_s16 = smov %s1131_s20  ;;  %25 = sbr.rel (!%p23_p12) target bundleno = 12 (0xc), region = 107 }
  0xa3   :  { %430 = vsyncpa [#allocation3], 1 }
  0xa4   :  { %432 = vsyncpa [#allocation3 + $0x1], 1 }
  0xa5   :  { %433 = vsyncpa [#allocation6], 1 }
  0xa6   :  { %435 = vsyncpa [#allocation6 + $0x1], 1 }
  0xa7   :  { %436 = vsyncpa [#allocation4], 1 }
  0xa8   :  { %438 = vsyncpa [#allocation4 + $0x1], 1 }
  0xa9   :  { %439 = vsyncpa [#allocation9], 1 }
  0xaa   :  { %441 = vsyncpa [#allocation9 + $0x1], 1 }

</bundles_post_ra>
